<compile_context>
chip_gen: v7x
topology: tpu7x:2x2x1
jax: 0.10.0
libtpu: 0.0.40
codegen_flags: <defaults>
</compile_context>

<pallas_src>
import functools
import math

import jax
import jax.numpy as jnp
from jax import lax
from jax.experimental import pallas as pl
from jax.experimental.pallas import tpu as pltpu

NUM_LAYERS = 3
LN_EPS = 1e-8          # LayerNorm eps in the PyTorch module
NORM_EPS = 1e-8        # final magnitude-normalization eps
_LANES = 128
_DEFAULT_ROW_TILE = 4096   # folded rows per grid step (multiple of 8)


def _make_kernel(num_layers, pfr, pfi, use_segmat):
    """Build the fused kernel body. pfr/pfi are static Python floats per layer."""

    def kernel(x_ref, cosp_ref, sinp_ref, ca_ref, cb_ref, bias_ref, *rest):
        if use_segmat:
            seg_ref, real_ref, imag_ref = rest
            seg = seg_ref[...]          # (W, W) block-diagonal matrix, entries 1/D

            def seg_mean(v):            # per-segment mean, broadcast to every lane (MXU)
                return jnp.dot(v, seg, preferred_element_type=jnp.float32)
        else:
            real_ref, imag_ref = rest

            def seg_mean(v):            # D is the full lane axis -> plain row mean (XLU)
                return jnp.mean(v, axis=-1, keepdims=True)

        x = x_ref[...].astype(jnp.float32)
        fr = jnp.zeros_like(x)
        fi = jnp.zeros_like(x)

        def normalize(v):               # one-pass LN statistics: E[v^2] - mu^2
            mu = seg_mean(v)
            var = jnp.maximum(seg_mean(v * v) - mu * mu, 0.0)
            return (v - mu) * lax.rsqrt(var + LN_EPS)

        for i in range(num_layers):     # static unrolled loop (num_layers is small)
            z_r = normalize(x * cosp_ref[i, :][None, :])
            z_i = normalize(x * sinp_ref[i, :][None, :])
            if pfr[i] != 0.0:           # coefA = gamma * tanh(intf) * cos(angle_i)
                ca = ca_ref[i, :][None, :]
                fr = fr + z_r * ca
                fi = fi + z_i * ca
            if pfi[i] != 0.0:           # coefB = gamma * tanh(intf) * sin(angle_i); ==0 for layer 0
                cb = cb_ref[i, :][None, :]
                fr = fr - z_i * cb
                fi = fi + z_r * cb

        # beta contributions from all layers, pre-summed in the wrapper, added once.
        fr = fr + bias_ref[0, :][None, :]
        fi = fi + bias_ref[1, :][None, :]
        inv = lax.rsqrt(fr * fr + fi * fi + NORM_EPS)   # EUP rsqrt instead of sqrt + divide
        real_ref[...] = (fr * inv).astype(real_ref.dtype)
        imag_ref[...] = (fi * inv).astype(imag_ref.dtype)

    return kernel


def dynamic_phase_space(x, layer_phases, interference_weights, ln_gamma, ln_beta,
                        *, num_layers=NUM_LAYERS, row_tile=_DEFAULT_ROW_TILE):
    """JAX/Pallas equivalent of DynamicPhaseSpace.forward.

    x: (B, S, D); all per-layer params: (num_layers, D).
    Returns (final_real, final_imag), each (B, S, D) in x.dtype (f32 math inside).
    """
    B, S, D = x.shape
    N = B * S
    f32 = jnp.float32
    row_tile = max(8, (row_tile // 8) * 8)

    # ---- fold k rows per 128-lane row (free row-major reshape) for lane-dense I/O ----
    k = _LANES // D if (D < _LANES and _LANES % D == 0) else 1
    W = k * D
    pad = (-N) % k
    x2 = x.reshape(N, D)
    if pad:
        x2 = jnp.concatenate([x2, jnp.zeros((pad, D), x.dtype)], axis=0)
    Nf = (N + pad) // k
    xf = x2.reshape(Nf, W)

    # ---- fold per-layer constants (cheap glue, plain JAX) ----
    itf = jnp.tanh(interference_weights.astype(f32))            # tanh(interference)
    g = ln_gamma.astype(f32) * itf                               # gamma * interference
    b = ln_beta.astype(f32) * itf                                # beta  * interference
    phases = jnp.tanh(layer_phases.astype(f32)) * math.pi
    cosp = jnp.cos(phases)
    sinp = jnp.sin(phases)

    pfr = [math.cos(2.0 * math.pi * i / num_layers) for i in range(num_layers)]
    pfi = [math.sin(2.0 * math.pi * i / num_layers) for i in range(num_layers)]
    pfr_c = jnp.asarray(pfr, f32)[:, None]
    pfi_c = jnp.asarray(pfi, f32)[:, None]
    coef_a = g * pfr_c                                           # z_real->final_real, z_imag->final_imag
    coef_b = g * pfi_c                                           # z_real->final_imag, -z_imag->final_real
    bias = jnp.stack([jnp.sum(b * (pfr_c - pfi_c), axis=0),
                      jnp.sum(b * (pfr_c + pfi_c), axis=0)], axis=0)   # (2, D)

    def widen(a):   # replicate per-dim params across the k folded rows in a 128-lane row
        return jnp.tile(a, (1, k)) if k > 1 else a
    cosp, sinp, coef_a, coef_b, bias = map(widen, (cosp, sinp, coef_a, coef_b, bias))

    # ---- grid / specs ----
    tm = row_tile if Nf > row_tile else Nf      # row_tile multiple of 8; tm=Nf is full-extent
    grid = (pl.cdiv(Nf, tm),)
    row_spec = pl.BlockSpec((tm, W), lambda i: (i, 0))
    const = lambda shape: pl.BlockSpec(shape, lambda i: (0, 0))

    in_specs = [row_spec, const((num_layers, W)), const((num_layers, W)),
                const((num_layers, W)), const((num_layers, W)), const((2, W))]
    inputs = [xf, cosp, sinp, coef_a, coef_b, bias]
    if k > 1:
        seg = jnp.arange(W, dtype=jnp.int32) // D
        segmat = (seg[:, None] == seg[None, :]).astype(f32) / float(D)  # block-diag mean matrix
        in_specs.append(const((W, W)))
        inputs.append(segmat)

    # Explicit VMEM budget: double-buffered (1 input + 2 output) blocks + resident params.
    item = jnp.dtype(x.dtype).itemsize
    est = 2 * tm * W * item + 2 * 2 * tm * W * item
    est += 2 * (4 * num_layers + 2) * W * 4 + (2 * W * W * 4 if k > 1 else 0)
    vmem_limit = min(max(int(est * 1.5) + (2 << 20), 16 << 20), 48 << 20)

    kernel = _make_kernel(num_layers, pfr, pfi, use_segmat=(k > 1))
    real_f, imag_f = pl.pallas_call(
        kernel,
        grid=grid,
        in_specs=in_specs,
        out_specs=(row_spec, row_spec),
        out_shape=(jax.ShapeDtypeStruct((Nf, W), x.dtype),
                   jax.ShapeDtypeStruct((Nf, W), x.dtype)),
        compiler_params=pltpu.CompilerParams(
            dimension_semantics=("parallel",),   # row tiles are independent -> megacore on v7x
            vmem_limit_bytes=vmem_limit),
    )(*inputs)

    def unfold(o):
        o = o.reshape(Nf * k, D)
        if pad:
            o = o[:N]
        return o.reshape(B, S, D)

    return unfold(real_f), unfold(imag_f)


def _reference(x, layer_phases, interference_weights, ln_gamma, ln_beta):
    """Pure-JAX reference mirroring the PyTorch forward (for sanity check)."""
    final_real = jnp.zeros_like(x)
    final_imag = jnp.zeros_like(x)
    for i in range(NUM_LAYERS):
        pa = jnp.tanh(layer_phases[i]) * math.pi
        real = x * jnp.cos(pa)
        imag = x * jnp.sin(pa)

        def ln(v):
            mu = jnp.mean(v, axis=-1, keepdims=True)
            var = jnp.mean((v - mu) ** 2, axis=-1, keepdims=True)
            return (v - mu) / jnp.sqrt(var + LN_EPS) * ln_gamma[i] + ln_beta[i]

        itf = jnp.tanh(interference_weights[i])
        real = ln(real) * itf
        imag = ln(imag) * itf
        ang = 2 * math.pi * i / NUM_LAYERS
        final_real = final_real + real * math.cos(ang) - imag * math.sin(ang)
        final_imag = final_imag + real * math.sin(ang) + imag * math.cos(ang)
    norm = jnp.sqrt(final_real ** 2 + final_imag ** 2 + NORM_EPS)
    return final_real / norm, final_imag / norm, final_real, final_imag, norm


if __name__ == "__main__":
    B, S, D = 2, 32, 32    # N=64 rows -> 16 folded 128-lane rows -> grid=(2,) with row_tile=8
    key = jax.random.PRNGKey(0)
    kx, kp, kw, kg, kb = jax.random.split(key, 5)

    x = jax.random.normal(kx, (B, S, D), dtype=jnp.float32)
    # NOTE: module __init__ uses zeros for layer_phases and ones/zeros for LN affine;
    # small random values are used here (deterministic) so the sin/beta/gamma folding
    # paths of the kernel are actually exercised.
    layer_phases = jax.random.normal(kp, (NUM_LAYERS, D), dtype=jnp.float32) * 0.1
    interference_weights = jax.random.normal(kw, (NUM_LAYERS, D), dtype=jnp.float32) * 0.02
    ln_gamma = 1.0 + 0.1 * jax.random.normal(kg, (NUM_LAYERS, D), dtype=jnp.float32)
    ln_beta = 0.05 * jax.random.normal(kb, (NUM_LAYERS, D), dtype=jnp.float32)

    # Small row_tile so the test exercises a multi-step pipelined grid; production
    # callers keep the default 4096-row tile.
    fwd = jax.jit(functools.partial(dynamic_phase_space, row_tile=8))
    real, imag = fwd(x, layer_phases, interference_weights, ln_gamma, ln_beta)
    jax.block_until_ready((real, imag))

    ref_real, ref_imag, ref_fr, ref_fi, ref_norm = _reference(
        x, layer_phases, interference_weights, ln_gamma, ln_beta)

    # Tight check in the un-amplified domain: undo the 1/sqrt(.+1e-8) normalization with
    # the reference norm.  This catches any real precision/logic bug at the 1e-5 level.
    assert jnp.allclose(real * ref_norm, ref_fr, atol=1e-5, rtol=1e-5), \
        float(jnp.max(jnp.abs(real * ref_norm - ref_fr)))
    assert jnp.allclose(imag * ref_norm, ref_fi, atol=1e-5, rtol=1e-5), \
        float(jnp.max(jnp.abs(imag * ref_norm - ref_fi)))
    # Sanity check of the normalized outputs.  Where final_real/imag nearly cancel, the
    # normalization amplifies benign f32 rounding (op-order) differences by up to
    # 1/sqrt(1e-8) = 1e4, so any pair of faithful f32 implementations can disagree by
    # ~1e-3 there; the tight check above already covers real errors.
    assert jnp.allclose(real, ref_real, atol=2e-3, rtol=1e-5)
    assert jnp.allclose(imag, ref_imag, atol=2e-3, rtol=1e-5)

    print("KERNEL_OK")
</pallas_src>

<mosaic_0001>
module attributes {stable_mosaic.version = 11 : i64} {
  func.func @kernel(%arg0: i32, %arg1: memref<8x128xf32, #tpu.memory_space<vmem>>, %arg2: memref<3x128xf32, #tpu.memory_space<vmem>>, %arg3: memref<3x128xf32, #tpu.memory_space<vmem>>, %arg4: memref<3x128xf32, #tpu.memory_space<vmem>>, %arg5: memref<3x128xf32, #tpu.memory_space<vmem>>, %arg6: memref<2x128xf32, #tpu.memory_space<vmem>>, %arg7: memref<128x128xf32, #tpu.memory_space<vmem>>, %arg8: memref<8x128xf32, #tpu.memory_space<vmem>>, %arg9: memref<8x128xf32, #tpu.memory_space<vmem>>) attributes {dimension_semantics = [#tpu.dimension_semantics<parallel>], iteration_bounds = array<i64: 2>, scalar_prefetch = 0 : i64, scratch_operands = 0 : i64, tpu.core_type = #tpu.core_type<tc>, window_params = [{transform_indices = @transform_0, window_bounds = array<i64: 8, 128>}, {pipeline_mode = #tpu.pipeline_mode<synchronous>, transform_indices = @transform_1, window_bounds = array<i64: 3, 128>}, {pipeline_mode = #tpu.pipeline_mode<synchronous>, transform_indices = @transform_2, window_bounds = array<i64: 3, 128>}, {pipeline_mode = #tpu.pipeline_mode<synchronous>, transform_indices = @transform_3, window_bounds = array<i64: 3, 128>}, {pipeline_mode = #tpu.pipeline_mode<synchronous>, transform_indices = @transform_4, window_bounds = array<i64: 3, 128>}, {pipeline_mode = #tpu.pipeline_mode<synchronous>, transform_indices = @transform_5, window_bounds = array<i64: 2, 128>}, {pipeline_mode = #tpu.pipeline_mode<synchronous>, transform_indices = @transform_6, window_bounds = array<i64: 128, 128>}, {transform_indices = @transform_7, window_bounds = array<i64: 8, 128>}, {transform_indices = @transform_8, window_bounds = array<i64: 8, 128>}]} {
    %c0 = arith.constant 0 : index
    %c0_0 = arith.constant 0 : index
    %0 = vector.load %arg7[%c0, %c0_0] : memref<128x128xf32, #tpu.memory_space<vmem>>, vector<128x128xf32>
    %c0_1 = arith.constant 0 : index
    %c0_2 = arith.constant 0 : index
    %1 = vector.load %arg1[%c0_1, %c0_2] : memref<8x128xf32, #tpu.memory_space<vmem>>, vector<8x128xf32>
    %cst = arith.constant 0.000000e+00 : f32
    %2 = vector.broadcast %cst : f32 to vector<8x128xf32>
    %cst_3 = arith.constant 0.000000e+00 : f32
    %3 = vector.broadcast %cst_3 : f32 to vector<8x128xf32>
    %c0_4 = arith.constant 0 : index
    %c0_5 = arith.constant 0 : index
    %4 = vector.load %arg2[%c0_4, %c0_5] : memref<3x128xf32, #tpu.memory_space<vmem>>, vector<1x128xf32>
    %5 = vector.shape_cast %4 : vector<1x128xf32> to vector<128xf32>
    %6 = vector.shape_cast %5 : vector<128xf32> to vector<1x128xf32>
    %7 = vector.broadcast %6 : vector<1x128xf32> to vector<8x128xf32>
    %8 = arith.mulf %1, %7 : vector<8x128xf32>
    %cst_6 = arith.constant dense<0.000000e+00> : vector<8x128xf32>
    %9 = tpu.matmul %8, %0, %cst_6 {dimension_numbers = #tpu.dot_dimension_numbers<[1], [0], [0], [1], [0, 0, 1, 1], [], []>} : vector<8x128xf32>, vector<128x128xf32>, vector<8x128xf32> -> vector<8x128xf32>
    %10 = arith.mulf %8, %8 : vector<8x128xf32>
    %cst_7 = arith.constant dense<0.000000e+00> : vector<8x128xf32>
    %11 = tpu.matmul %10, %0, %cst_7 {dimension_numbers = #tpu.dot_dimension_numbers<[1], [0], [0], [1], [0, 0, 1, 1], [], []>} : vector<8x128xf32>, vector<128x128xf32>, vector<8x128xf32> -> vector<8x128xf32>
    %12 = arith.mulf %9, %9 : vector<8x128xf32>
    %13 = arith.subf %11, %12 : vector<8x128xf32>
    %cst_8 = arith.constant 0.000000e+00 : f32
    %14 = vector.broadcast %cst_8 : f32 to vector<8x128xf32>
    %15 = arith.maximumf %13, %14 : vector<8x128xf32>
    %16 = arith.subf %8, %9 : vector<8x128xf32>
    %cst_9 = arith.constant 9.99999993E-9 : f32
    %17 = vector.broadcast %cst_9 : f32 to vector<8x128xf32>
    %18 = arith.addf %15, %17 : vector<8x128xf32>
    %19 = math.rsqrt %18 : vector<8x128xf32>
    %20 = arith.mulf %16, %19 : vector<8x128xf32>
    %c0_10 = arith.constant 0 : index
    %c0_11 = arith.constant 0 : index
    %21 = vector.load %arg3[%c0_10, %c0_11] : memref<3x128xf32, #tpu.memory_space<vmem>>, vector<1x128xf32>
    %22 = vector.shape_cast %21 : vector<1x128xf32> to vector<128xf32>
    %23 = vector.shape_cast %22 : vector<128xf32> to vector<1x128xf32>
    %24 = vector.broadcast %23 : vector<1x128xf32> to vector<8x128xf32>
    %25 = arith.mulf %1, %24 : vector<8x128xf32>
    %cst_12 = arith.constant dense<0.000000e+00> : vector<8x128xf32>
    %26 = tpu.matmul %25, %0, %cst_12 {dimension_numbers = #tpu.dot_dimension_numbers<[1], [0], [0], [1], [0, 0, 1, 1], [], []>} : vector<8x128xf32>, vector<128x128xf32>, vector<8x128xf32> -> vector<8x128xf32>
    %27 = arith.mulf %25, %25 : vector<8x128xf32>
    %cst_13 = arith.constant dense<0.000000e+00> : vector<8x128xf32>
    %28 = tpu.matmul %27, %0, %cst_13 {dimension_numbers = #tpu.dot_dimension_numbers<[1], [0], [0], [1], [0, 0, 1, 1], [], []>} : vector<8x128xf32>, vector<128x128xf32>, vector<8x128xf32> -> vector<8x128xf32>
    %29 = arith.mulf %26, %26 : vector<8x128xf32>
    %30 = arith.subf %28, %29 : vector<8x128xf32>
    %cst_14 = arith.constant 0.000000e+00 : f32
    %31 = vector.broadcast %cst_14 : f32 to vector<8x128xf32>
    %32 = arith.maximumf %30, %31 : vector<8x128xf32>
    %33 = arith.subf %25, %26 : vector<8x128xf32>
    %cst_15 = arith.constant 9.99999993E-9 : f32
    %34 = vector.broadcast %cst_15 : f32 to vector<8x128xf32>
    %35 = arith.addf %32, %34 : vector<8x128xf32>
    %36 = math.rsqrt %35 : vector<8x128xf32>
    %37 = arith.mulf %33, %36 : vector<8x128xf32>
    %c0_16 = arith.constant 0 : index
    %c0_17 = arith.constant 0 : index
    %38 = vector.load %arg4[%c0_16, %c0_17] : memref<3x128xf32, #tpu.memory_space<vmem>>, vector<1x128xf32>
    %39 = vector.shape_cast %38 : vector<1x128xf32> to vector<128xf32>
    %40 = vector.shape_cast %39 : vector<128xf32> to vector<1x128xf32>
    %41 = vector.broadcast %40 : vector<1x128xf32> to vector<8x128xf32>
    %42 = arith.mulf %20, %41 : vector<8x128xf32>
    %43 = arith.addf %2, %42 : vector<8x128xf32>
    %44 = vector.broadcast %40 : vector<1x128xf32> to vector<8x128xf32>
    %45 = arith.mulf %37, %44 : vector<8x128xf32>
    %46 = arith.addf %3, %45 : vector<8x128xf32>
    %c1 = arith.constant 1 : index
    %c0_18 = arith.constant 0 : index
    %47 = vector.load %arg2[%c1, %c0_18] : memref<3x128xf32, #tpu.memory_space<vmem>>, vector<1x128xf32>
    %48 = vector.shape_cast %47 : vector<1x128xf32> to vector<128xf32>
    %49 = vector.shape_cast %48 : vector<128xf32> to vector<1x128xf32>
    %50 = vector.broadcast %49 : vector<1x128xf32> to vector<8x128xf32>
    %51 = arith.mulf %1, %50 : vector<8x128xf32>
    %cst_19 = arith.constant dense<0.000000e+00> : vector<8x128xf32>
    %52 = tpu.matmul %51, %0, %cst_19 {dimension_numbers = #tpu.dot_dimension_numbers<[1], [0], [0], [1], [0, 0, 1, 1], [], []>} : vector<8x128xf32>, vector<128x128xf32>, vector<8x128xf32> -> vector<8x128xf32>
    %53 = arith.mulf %51, %51 : vector<8x128xf32>
    %cst_20 = arith.constant dense<0.000000e+00> : vector<8x128xf32>
    %54 = tpu.matmul %53, %0, %cst_20 {dimension_numbers = #tpu.dot_dimension_numbers<[1], [0], [0], [1], [0, 0, 1, 1], [], []>} : vector<8x128xf32>, vector<128x128xf32>, vector<8x128xf32> -> vector<8x128xf32>
    %55 = arith.mulf %52, %52 : vector<8x128xf32>
    %56 = arith.subf %54, %55 : vector<8x128xf32>
    %cst_21 = arith.constant 0.000000e+00 : f32
    %57 = vector.broadcast %cst_21 : f32 to vector<8x128xf32>
    %58 = arith.maximumf %56, %57 : vector<8x128xf32>
    %59 = arith.subf %51, %52 : vector<8x128xf32>
    %cst_22 = arith.constant 9.99999993E-9 : f32
    %60 = vector.broadcast %cst_22 : f32 to vector<8x128xf32>
    %61 = arith.addf %58, %60 : vector<8x128xf32>
    %62 = math.rsqrt %61 : vector<8x128xf32>
    %63 = arith.mulf %59, %62 : vector<8x128xf32>
    %c1_23 = arith.constant 1 : index
    %c0_24 = arith.constant 0 : index
    %64 = vector.load %arg3[%c1_23, %c0_24] : memref<3x128xf32, #tpu.memory_space<vmem>>, vector<1x128xf32>
    %65 = vector.shape_cast %64 : vector<1x128xf32> to vector<128xf32>
    %66 = vector.shape_cast %65 : vector<128xf32> to vector<1x128xf32>
    %67 = vector.broadcast %66 : vector<1x128xf32> to vector<8x128xf32>
    %68 = arith.mulf %1, %67 : vector<8x128xf32>
    %cst_25 = arith.constant dense<0.000000e+00> : vector<8x128xf32>
    %69 = tpu.matmul %68, %0, %cst_25 {dimension_numbers = #tpu.dot_dimension_numbers<[1], [0], [0], [1], [0, 0, 1, 1], [], []>} : vector<8x128xf32>, vector<128x128xf32>, vector<8x128xf32> -> vector<8x128xf32>
    %70 = arith.mulf %68, %68 : vector<8x128xf32>
    %cst_26 = arith.constant dense<0.000000e+00> : vector<8x128xf32>
    %71 = tpu.matmul %70, %0, %cst_26 {dimension_numbers = #tpu.dot_dimension_numbers<[1], [0], [0], [1], [0, 0, 1, 1], [], []>} : vector<8x128xf32>, vector<128x128xf32>, vector<8x128xf32> -> vector<8x128xf32>
    %72 = arith.mulf %69, %69 : vector<8x128xf32>
    %73 = arith.subf %71, %72 : vector<8x128xf32>
    %cst_27 = arith.constant 0.000000e+00 : f32
    %74 = vector.broadcast %cst_27 : f32 to vector<8x128xf32>
    %75 = arith.maximumf %73, %74 : vector<8x128xf32>
    %76 = arith.subf %68, %69 : vector<8x128xf32>
    %cst_28 = arith.constant 9.99999993E-9 : f32
    %77 = vector.broadcast %cst_28 : f32 to vector<8x128xf32>
    %78 = arith.addf %75, %77 : vector<8x128xf32>
    %79 = math.rsqrt %78 : vector<8x128xf32>
    %80 = arith.mulf %76, %79 : vector<8x128xf32>
    %c1_29 = arith.constant 1 : index
    %c0_30 = arith.constant 0 : index
    %81 = vector.load %arg4[%c1_29, %c0_30] : memref<3x128xf32, #tpu.memory_space<vmem>>, vector<1x128xf32>
    %82 = vector.shape_cast %81 : vector<1x128xf32> to vector<128xf32>
    %83 = vector.shape_cast %82 : vector<128xf32> to vector<1x128xf32>
    %84 = vector.broadcast %83 : vector<1x128xf32> to vector<8x128xf32>
    %85 = arith.mulf %63, %84 : vector<8x128xf32>
    %86 = arith.addf %43, %85 : vector<8x128xf32>
    %87 = vector.broadcast %83 : vector<1x128xf32> to vector<8x128xf32>
    %88 = arith.mulf %80, %87 : vector<8x128xf32>
    %89 = arith.addf %46, %88 : vector<8x128xf32>
    %c1_31 = arith.constant 1 : index
    %c0_32 = arith.constant 0 : index
    %90 = vector.load %arg5[%c1_31, %c0_32] : memref<3x128xf32, #tpu.memory_space<vmem>>, vector<1x128xf32>
    %91 = vector.shape_cast %90 : vector<1x128xf32> to vector<128xf32>
    %92 = vector.shape_cast %91 : vector<128xf32> to vector<1x128xf32>
    %93 = vector.broadcast %92 : vector<1x128xf32> to vector<8x128xf32>
    %94 = arith.mulf %80, %93 : vector<8x128xf32>
    %95 = arith.subf %86, %94 : vector<8x128xf32>
    %96 = vector.broadcast %92 : vector<1x128xf32> to vector<8x128xf32>
    %97 = arith.mulf %63, %96 : vector<8x128xf32>
    %98 = arith.addf %89, %97 : vector<8x128xf32>
    %c2 = arith.constant 2 : index
    %c0_33 = arith.constant 0 : index
    %99 = vector.load %arg2[%c2, %c0_33] : memref<3x128xf32, #tpu.memory_space<vmem>>, vector<1x128xf32>
    %100 = vector.shape_cast %99 : vector<1x128xf32> to vector<128xf32>
    %101 = vector.shape_cast %100 : vector<128xf32> to vector<1x128xf32>
    %102 = vector.broadcast %101 : vector<1x128xf32> to vector<8x128xf32>
    %103 = arith.mulf %1, %102 : vector<8x128xf32>
    %cst_34 = arith.constant dense<0.000000e+00> : vector<8x128xf32>
    %104 = tpu.matmul %103, %0, %cst_34 {dimension_numbers = #tpu.dot_dimension_numbers<[1], [0], [0], [1], [0, 0, 1, 1], [], []>} : vector<8x128xf32>, vector<128x128xf32>, vector<8x128xf32> -> vector<8x128xf32>
    %105 = arith.mulf %103, %103 : vector<8x128xf32>
    %cst_35 = arith.constant dense<0.000000e+00> : vector<8x128xf32>
    %106 = tpu.matmul %105, %0, %cst_35 {dimension_numbers = #tpu.dot_dimension_numbers<[1], [0], [0], [1], [0, 0, 1, 1], [], []>} : vector<8x128xf32>, vector<128x128xf32>, vector<8x128xf32> -> vector<8x128xf32>
    %107 = arith.mulf %104, %104 : vector<8x128xf32>
    %108 = arith.subf %106, %107 : vector<8x128xf32>
    %cst_36 = arith.constant 0.000000e+00 : f32
    %109 = vector.broadcast %cst_36 : f32 to vector<8x128xf32>
    %110 = arith.maximumf %108, %109 : vector<8x128xf32>
    %111 = arith.subf %103, %104 : vector<8x128xf32>
    %cst_37 = arith.constant 9.99999993E-9 : f32
    %112 = vector.broadcast %cst_37 : f32 to vector<8x128xf32>
    %113 = arith.addf %110, %112 : vector<8x128xf32>
    %114 = math.rsqrt %113 : vector<8x128xf32>
    %115 = arith.mulf %111, %114 : vector<8x128xf32>
    %c2_38 = arith.constant 2 : index
    %c0_39 = arith.constant 0 : index
    %116 = vector.load %arg3[%c2_38, %c0_39] : memref<3x128xf32, #tpu.memory_space<vmem>>, vector<1x128xf32>
    %117 = vector.shape_cast %116 : vector<1x128xf32> to vector<128xf32>
    %118 = vector.shape_cast %117 : vector<128xf32> to vector<1x128xf32>
    %119 = vector.broadcast %118 : vector<1x128xf32> to vector<8x128xf32>
    %120 = arith.mulf %1, %119 : vector<8x128xf32>
    %cst_40 = arith.constant dense<0.000000e+00> : vector<8x128xf32>
    %121 = tpu.matmul %120, %0, %cst_40 {dimension_numbers = #tpu.dot_dimension_numbers<[1], [0], [0], [1], [0, 0, 1, 1], [], []>} : vector<8x128xf32>, vector<128x128xf32>, vector<8x128xf32> -> vector<8x128xf32>
    %122 = arith.mulf %120, %120 : vector<8x128xf32>
    %cst_41 = arith.constant dense<0.000000e+00> : vector<8x128xf32>
    %123 = tpu.matmul %122, %0, %cst_41 {dimension_numbers = #tpu.dot_dimension_numbers<[1], [0], [0], [1], [0, 0, 1, 1], [], []>} : vector<8x128xf32>, vector<128x128xf32>, vector<8x128xf32> -> vector<8x128xf32>
    %124 = arith.mulf %121, %121 : vector<8x128xf32>
    %125 = arith.subf %123, %124 : vector<8x128xf32>
    %cst_42 = arith.constant 0.000000e+00 : f32
    %126 = vector.broadcast %cst_42 : f32 to vector<8x128xf32>
    %127 = arith.maximumf %125, %126 : vector<8x128xf32>
    %128 = arith.subf %120, %121 : vector<8x128xf32>
    %cst_43 = arith.constant 9.99999993E-9 : f32
    %129 = vector.broadcast %cst_43 : f32 to vector<8x128xf32>
    %130 = arith.addf %127, %129 : vector<8x128xf32>
    %131 = math.rsqrt %130 : vector<8x128xf32>
    %132 = arith.mulf %128, %131 : vector<8x128xf32>
    %c2_44 = arith.constant 2 : index
    %c0_45 = arith.constant 0 : index
    %133 = vector.load %arg4[%c2_44, %c0_45] : memref<3x128xf32, #tpu.memory_space<vmem>>, vector<1x128xf32>
    %134 = vector.shape_cast %133 : vector<1x128xf32> to vector<128xf32>
    %135 = vector.shape_cast %134 : vector<128xf32> to vector<1x128xf32>
    %136 = vector.broadcast %135 : vector<1x128xf32> to vector<8x128xf32>
    %137 = arith.mulf %115, %136 : vector<8x128xf32>
    %138 = arith.addf %95, %137 : vector<8x128xf32>
    %139 = vector.broadcast %135 : vector<1x128xf32> to vector<8x128xf32>
    %140 = arith.mulf %132, %139 : vector<8x128xf32>
    %141 = arith.addf %98, %140 : vector<8x128xf32>
    %c2_46 = arith.constant 2 : index
    %c0_47 = arith.constant 0 : index
    %142 = vector.load %arg5[%c2_46, %c0_47] : memref<3x128xf32, #tpu.memory_space<vmem>>, vector<1x128xf32>
    %143 = vector.shape_cast %142 : vector<1x128xf32> to vector<128xf32>
    %144 = vector.shape_cast %143 : vector<128xf32> to vector<1x128xf32>
    %145 = vector.broadcast %144 : vector<1x128xf32> to vector<8x128xf32>
    %146 = arith.mulf %132, %145 : vector<8x128xf32>
    %147 = arith.subf %138, %146 : vector<8x128xf32>
    %148 = vector.broadcast %144 : vector<1x128xf32> to vector<8x128xf32>
    %149 = arith.mulf %115, %148 : vector<8x128xf32>
    %150 = arith.addf %141, %149 : vector<8x128xf32>
    %c0_48 = arith.constant 0 : index
    %c0_49 = arith.constant 0 : index
    %151 = vector.load %arg6[%c0_48, %c0_49] : memref<2x128xf32, #tpu.memory_space<vmem>>, vector<1x128xf32>
    %152 = vector.shape_cast %151 : vector<1x128xf32> to vector<128xf32>
    %153 = vector.shape_cast %152 : vector<128xf32> to vector<1x128xf32>
    %154 = vector.broadcast %153 : vector<1x128xf32> to vector<8x128xf32>
    %155 = arith.addf %147, %154 : vector<8x128xf32>
    %c1_50 = arith.constant 1 : index
    %c0_51 = arith.constant 0 : index
    %156 = vector.load %arg6[%c1_50, %c0_51] : memref<2x128xf32, #tpu.memory_space<vmem>>, vector<1x128xf32>
    %157 = vector.shape_cast %156 : vector<1x128xf32> to vector<128xf32>
    %158 = vector.shape_cast %157 : vector<128xf32> to vector<1x128xf32>
    %159 = vector.broadcast %158 : vector<1x128xf32> to vector<8x128xf32>
    %160 = arith.addf %150, %159 : vector<8x128xf32>
    %161 = arith.mulf %155, %155 : vector<8x128xf32>
    %162 = arith.mulf %160, %160 : vector<8x128xf32>
    %163 = arith.addf %161, %162 : vector<8x128xf32>
    %cst_52 = arith.constant 9.99999993E-9 : f32
    %164 = vector.broadcast %cst_52 : f32 to vector<8x128xf32>
    %165 = arith.addf %163, %164 : vector<8x128xf32>
    %166 = math.rsqrt %165 : vector<8x128xf32>
    %167 = arith.mulf %155, %166 : vector<8x128xf32>
    %c0_53 = arith.constant 0 : index
    %c0_54 = arith.constant 0 : index
    %168 = vector.load %arg8[%c0_53, %c0_54] : memref<8x128xf32, #tpu.memory_space<vmem>>, vector<8x128xf32>
    tpu.vector_store %arg8[%c0_53, %c0_54], %167 {strides = array<i32>} : memref<8x128xf32, #tpu.memory_space<vmem>>, vector<8x128xf32>,
    %169 = arith.mulf %160, %166 : vector<8x128xf32>
    %c0_55 = arith.constant 0 : index
    %c0_56 = arith.constant 0 : index
    %170 = vector.load %arg9[%c0_55, %c0_56] : memref<8x128xf32, #tpu.memory_space<vmem>>, vector<8x128xf32>
    tpu.vector_store %arg9[%c0_55, %c0_56], %169 {strides = array<i32>} : memref<8x128xf32, #tpu.memory_space<vmem>>, vector<8x128xf32>,
    return
  }
  func.func @transform_0(%arg0: i32) -> (i32, i32) {
    %c0_i32 = arith.constant 0 : i32
    %c0_i32_0 = arith.constant 0 : i32
    return %arg0, %c0_i32 : i32, i32
  }
  func.func @transform_1(%arg0: i32) -> (i32, i32) {
    %c0_i32 = arith.constant 0 : i32
    %c0_i32_0 = arith.constant 0 : i32
    %c0_i32_1 = arith.constant 0 : i32
    return %c0_i32, %c0_i32_0 : i32, i32
  }
  func.func @transform_2(%arg0: i32) -> (i32, i32) {
    %c0_i32 = arith.constant 0 : i32
    %c0_i32_0 = arith.constant 0 : i32
    %c0_i32_1 = arith.constant 0 : i32
    return %c0_i32, %c0_i32_0 : i32, i32
  }
  func.func @transform_3(%arg0: i32) -> (i32, i32) {
    %c0_i32 = arith.constant 0 : i32
    %c0_i32_0 = arith.constant 0 : i32
    %c0_i32_1 = arith.constant 0 : i32
    return %c0_i32, %c0_i32_0 : i32, i32
  }
  func.func @transform_4(%arg0: i32) -> (i32, i32) {
    %c0_i32 = arith.constant 0 : i32
    %c0_i32_0 = arith.constant 0 : i32
    %c0_i32_1 = arith.constant 0 : i32
    return %c0_i32, %c0_i32_0 : i32, i32
  }
  func.func @transform_5(%arg0: i32) -> (i32, i32) {
    %c0_i32 = arith.constant 0 : i32
    %c0_i32_0 = arith.constant 0 : i32
    %c0_i32_1 = arith.constant 0 : i32
    return %c0_i32, %c0_i32_0 : i32, i32
  }
  func.func @transform_6(%arg0: i32) -> (i32, i32) {
    %c0_i32 = arith.constant 0 : i32
    %c0_i32_0 = arith.constant 0 : i32
    %c0_i32_1 = arith.constant 0 : i32
    return %c0_i32, %c0_i32_0 : i32, i32
  }
  func.func @transform_7(%arg0: i32) -> (i32, i32) {
    %c0_i32 = arith.constant 0 : i32
    %c0_i32_0 = arith.constant 0 : i32
    return %arg0, %c0_i32 : i32, i32
  }
  func.func @transform_8(%arg0: i32) -> (i32, i32) {
    %c0_i32 = arith.constant 0 : i32
    %c0_i32_0 = arith.constant 0 : i32
    return %arg0, %c0_i32 : i32, i32
  }
}

</mosaic_0001>

<bundles_post_ra>
// kernel: tile.34
= control target key start
LH: loop header
LB: loop body
LE: loop exit
PB: predicated region body
PF: predicated region fallthrough
CT: control target
= control target key end

     0   :  { %vm16_vm0 = vcmask 261120   ;;  %s49_s12 = smov 32   ;;  %s50_s13 = smov 64   ;;  %vm22_vm1 = vcmask 1048320   ;;  %vm28_vm2 = vcmask 785920   ;;  %vm34_vm3 = vcmask 523520   ;;  %s73_s0 = inlined_call_operand.vmem [shape: f32[3,4,32], index: 0, kind: input, shape index: {}]   ;;  %s74_s1 = inlined_call_operand.vmem [shape: f32[3,128], index: 1, kind: output, shape index: {}]  }
   0x1   :  { %v43_v0 = vld [vmem:[%s73_s0 + $0x8] sm:$0xf]  ;;  %v44_v1 = vld [vmem:[%s73_s0 + $0x4] sm:$0xf]  ;;  %v13_v2 = vld [vmem:[%s73_s0] sm:$0xf] }
   0x2   :  { %8 = vst [vmem:[#allocation1 + $0x10] sm:$0xf] %v43_v0  ;;  %12 = vst [vmem:[#allocation1 + $0x8] sm:$0xf] %v44_v1  ;;  %s48_s0 = smov 96  }
   0x3   :  { %14 = vst [vmem:[#allocation1] sm:$0xf] %v13_v2 }
   0xa   :  { %v19_v3 = vld [vmem:[#allocation1 + $0x3] ss:$8 sm:$0x7]   ;;  %v31_v4 = vld [vmem:[#allocation1 + $0x1] ss:$8 sm:$0x7]  }
   0xb   :  { %20 = vrot.lane.b32.xlu0 %v19_v3, %s48_s0  ;;  %v15_v5 = vld [vmem:[#allocation1] ss:$8 sm:$0x7]   ;;  %v25_v6 = vld [vmem:[#allocation1 + $0x2] ss:$8 sm:$0x7]   ;;  %32 = vrot.lane.b32.xlu1 %v31_v4, %s49_s12 }
   0xc   :  { %17 = vst.msk [vmem:[#allocation0] sm:$0x7] %vm16_vm0, %v15_v5  }
   0xf   :  { %26 = vrot.lane.b32.xlu0 %v25_v6, %s50_s13 }
  0x7d   :  { %v21_v7 = vpop.permute.xlu0 %20   ;;  %v33_v8 = vpop.permute.xlu1 %32  }
  0x7e   :  { %23 = vst.msk [vmem:[#allocation0] sm:$0x7] %vm22_vm1, %v21_v7  }
  0x81   :  { %v27_v9 = vpop.permute.xlu0 %26  }
  0x82   :  { %29 = vst.msk [vmem:[#allocation0] sm:$0x7] %vm28_vm2, %v27_v9  }
  0x83   :  { %35 = vst.msk [vmem:[#allocation0] sm:$0x7] %vm34_vm3, %v33_v8  }
  0x8a   :  { %v39_v10 = vld [vmem:[#allocation0] sm:$0xf] }
  0x8b   :  { %41 = vst [vmem:[%s74_s1] sm:$0xf] %v39_v10 }

// kernel: tile.49
= control target key start
LH: loop header
LB: loop body
LE: loop exit
PB: predicated region body
PF: predicated region fallthrough
CT: control target
= control target key end

     0   :  { %s29_s10 = smov 3  ;;  %s10_s11 = smov 3  ;;  %vm12_vm0 = vcmask 261120   ;;  %vm19_vm1 = vcmask 1048320   ;;  %vm26_vm2 = vcmask 785920   ;;  %vm33_vm3 = vcmask 523520   ;;  %s67_s0 = inlined_call_operand.vmem [shape: f32[2,4,32], index: 0, kind: input, shape index: {}]   ;;  %s68_s1 = inlined_call_operand.vmem [shape: f32[2,128], index: 1, kind: output, shape index: {}]  }
   0x1   :  { %v41_v0 = vld [vmem:[%s67_s0 + $0x4] sm:$0xf]  ;;  %v8_v1 = vld [vmem:[%s67_s0] sm:$0xf]  ;;  %s15_s0 = smov 3  ;;  %s22_s12 = smov 3 }
   0x2   :  { %7 = vst [vmem:[#allocation1 + $0x8] sm:$0xf] %v41_v0  ;;  %9 = vst [vmem:[#allocation1] sm:$0xf] %v8_v1  ;;  %s45_s13 = smov 96   ;;  %s46_s14 = smov 32  }
   0x3   :  { %s47_s15 = smov 64  }
   0x9   :  { %v16_v2 = vld [vmem:[#allocation1 + $0x3] ss:$8 sm:%s15_s0]   ;;  %v30_v3 = vld [vmem:[#allocation1 + $0x1] ss:$8 sm:%s29_s10]   ;;  %v11_v4 = vld [vmem:[#allocation1] ss:$8 sm:%s10_s11]  }
   0xa   :  { %17 = vrot.lane.b32.xlu0 %v16_v2, %s45_s13  ;;  %31 = vrot.lane.b32.xlu1 %v30_v3, %s46_s14  ;;  %v23_v5 = vld [vmem:[#allocation1 + $0x2] ss:$8 sm:%s22_s12]   ;;  %13 = vst.msk [vmem:[#allocation0] sm:$0x3] %vm12_vm0, %v11_v4  }
   0xe   :  { %24 = vrot.lane.b32.xlu0 %v23_v5, %s47_s15 }
  0x7c   :  { %v18_v6 = vpop.permute.xlu0 %17   ;;  %v32_v7 = vpop.permute.xlu1 %31  }
  0x7d   :  { %20 = vst.msk [vmem:[#allocation0] sm:$0x3] %vm19_vm1, %v18_v6  }
  0x80   :  { %v25_v8 = vpop.permute.xlu0 %24  }
  0x81   :  { %27 = vst.msk [vmem:[#allocation0] sm:$0x3] %vm26_vm2, %v25_v8  }
  0x82   :  { %34 = vst.msk [vmem:[#allocation0] sm:$0x3] %vm33_vm3, %v32_v7  }
  0x89   :  { %v38_v9 = vld [vmem:[#allocation0] sm:$0x3] }
  0x8a   :  { %40 = vst [vmem:[%s68_s1] sm:$0x3] %v38_v9 }

</bundles_post_ra>
